<compile_context>
chip_gen: v7x
topology: tpu7x:2x2x1
jax: 0.10.0
libtpu: 0.0.40
codegen_flags: <defaults>
</compile_context>

<pallas_src>
import functools
import math

import jax
import jax.numpy as jnp
from jax import lax
from jax.experimental import pallas as pl
from jax.experimental.pallas import tpu as pltpu


# ----------------------------- configuration --------------------------------
HIDDEN_D = 32          # hidden_d
N_HEADS = 2            # n_heads
MLP_RATIO = 4
D_HEAD = HIDDEN_D // N_HEADS
D_MLP = MLP_RATIO * HIDDEN_D
LN_EPS = 1e-5          # torch.nn.LayerNorm default eps

# Row-tile target.  Live f32 intermediates are ~2 KB/row (qkv 384 B + h1 512 B
# + x/out1/xn slabs), so 1024 rows ~ 2 MiB of live values plus the
# double-buffered 128 KiB in/out slabs: comfortably inside the 32 MiB scoped
# VMEM default on v5e/v6e and v7x's smaller 64 MiB physical VMEM.
MAX_TILE_ROWS = 1024


def _layernorm(x, gamma, beta):
    # PyTorch LayerNorm: biased variance over last dim, eps inside sqrt.
    mu = jnp.mean(x, axis=-1, keepdims=True)
    var = jnp.mean((x - mu) ** 2, axis=-1, keepdims=True)
    return (x - mu) * lax.rsqrt(var + LN_EPS) * gamma + beta


def _gelu_exact(x):
    # torch.nn.GELU() default = exact erf-based GELU.
    return 0.5 * x * (1.0 + lax.erf(x * (1.0 / math.sqrt(2.0))))


# ------------------------------- kernel --------------------------------------
def vit_block_kernel(
    x_ref,          # (R, D)   flattened rows of `seq_per_tile` sequences
    wqkv_ref,       # (D, 3D)  block-diagonal fused QKV weights (scale folded into Q)
    w1t_ref,        # (D, 4D)  mlp first linear, pre-transposed
    w2t_ref,        # (4D, D)  mlp second linear, pre-transposed
    vecs_ref,       # (8, 4D)  packed vector params (see pack_params)
    o_ref,          # (R, D)
    msa_ref,        # (R, D)   VMEM scratch: per-head attention outputs
    *,
    seq_per_tile,
    n_tokens,
):
    D, dh, H = HIDDEN_D, D_HEAD, N_HEADS
    S, N = seq_per_tile, n_tokens

    x = x_ref[...]                                   # (R, D)

    g1 = vecs_ref[0:1, :D]
    b1 = vecs_ref[1:2, :D]
    g2 = vecs_ref[2:3, :D]
    b2 = vecs_ref[3:4, :D]
    bqkv = vecs_ref[4:5, :3 * D]
    c1 = vecs_ref[5:6, :]                            # (1, 4D)
    c2 = vecs_ref[6:7, :D]

    # ---- MHSA branch: out1 = x + MSA(norm1(x)) ----
    xn = _layernorm(x, g1, b1)                       # (R, D)
    # One fused block-diagonal matmul for all heads' Q, K, V
    # (1/sqrt(d_head) folded into the Q part); whole-slab MXU pass.
    qkv = jnp.dot(xn, wqkv_ref[...],
                  preferred_element_type=jnp.float32) + bqkv      # (R, 3D)

    # Per head: batched (over the S sequences of this tile) attention; result
    # is written directly into the msa scratch -> no per-sequence Python
    # unrolling and no lane concatenates.
    for h in range(H):                               # H == 2, static & tiny
        q = qkv[:, h * dh:(h + 1) * dh].reshape(S, N, dh)
        k = qkv[:, D + h * dh:D + (h + 1) * dh].reshape(S, N, dh)
        v = qkv[:, 2 * D + h * dh:2 * D + (h + 1) * dh].reshape(S, N, dh)
        scores = jnp.einsum("snd,smd->snm", q, k,
                            preferred_element_type=jnp.float32)   # (S, N, N)
        m = jnp.max(scores, axis=-1, keepdims=True)
        e = jnp.exp(scores - m)
        att = e / jnp.sum(e, axis=-1, keepdims=True)               # exact softmax
        out_h = jnp.einsum("snm,smd->snd", att, v,
                           preferred_element_type=jnp.float32)     # (S, N, dh)
        msa_ref[:, h * dh:(h + 1) * dh] = out_h.reshape(S * N, dh)

    out1 = x + msa_ref[...]                          # residual 1

    # ---- MLP branch: out = out1 + MLP(norm2(out1)) ----
    xn2 = _layernorm(out1, g2, b2)                                          # (R, D)
    h1 = _gelu_exact(jnp.dot(xn2, w1t_ref[...],
                             preferred_element_type=jnp.float32) + c1)      # (R, 4D)
    h2 = jnp.dot(h1, w2t_ref[...],
                 preferred_element_type=jnp.float32) + c2                   # (R, D)

    # D=32 < 128 lanes -> masked stores; repacking the result lane-dense is
    # only worth it on v5e if profiling shows the store slot saturating.
    o_ref[...] = out1 + h2


# --------------------------- host-side packing --------------------------------
def _block_diag(blocks):
    """Block-diagonal (H*dh, H*dh) matrix from a list of (dh, dh) blocks."""
    n = len(blocks)
    dh = blocks[0].shape[0]
    out = jnp.zeros((n * dh, n * dh), blocks[0].dtype)
    for h, blk in enumerate(blocks):
        out = out.at[h * dh:(h + 1) * dh, h * dh:(h + 1) * dh].set(blk)
    return out


def pack_params(params):
    """Pre-transpose / fuse / pack parameters.

    Call ONCE at parameter-load time (hoisted out of the jitted forward so the
    block-diagonal scatter and transposes are not re-run per call).
    """
    D, H, dh, DM = HIDDEN_D, N_HEADS, D_HEAD, D_MLP
    assert 3 * D <= DM, "packed-vector rows too narrow to hold the fused QKV bias"
    scale = 1.0 / math.sqrt(dh)

    # torch Linear weights are (out, in); transpose to (in, out) so the kernel
    # never transposes.  Fold the attention scale into the Q weights + bias.
    wq_t = jnp.transpose(params["wq"], (0, 2, 1)) * scale   # (H, dh, dh)
    wk_t = jnp.transpose(params["wk"], (0, 2, 1))
    wv_t = jnp.transpose(params["wv"], (0, 2, 1))

    wqkv = jnp.concatenate(
        [_block_diag([wq_t[h] for h in range(H)]),
         _block_diag([wk_t[h] for h in range(H)]),
         _block_diag([wv_t[h] for h in range(H)])], axis=1)   # (D, 3D)

    bqkv = jnp.concatenate([params["bq"].reshape(-1) * scale,
                            params["bk"].reshape(-1),
                            params["bv"].reshape(-1)])        # (3D,)

    w1t = params["w1"].T                                      # (D, 4D)
    w2t = params["w2"].T                                      # (4D, D)

    def row(v):
        v = v.reshape(-1)
        return jnp.pad(v, (0, DM - v.shape[0]))

    vecs = jnp.stack([
        row(params["g1"]), row(params["b1"]),
        row(params["g2"]), row(params["b2"]),
        row(bqkv), row(params["c1"]), row(params["c2"]),
        jnp.zeros((DM,), jnp.float32),
    ])                                                        # (8, 4D)

    # NOTE: bf16 weights would halve DMA bytes on v6e/v7x (accumulate in f32
    # via preferred_element_type) but changes numerics vs the fp32 reference.
    return wqkv, w1t, w2t, vecs


# ------------------------------- wrapper --------------------------------------
def _choose_seq_per_tile(B, N):
    """Largest #sequences per row-tile s.t. rows<=MAX_TILE_ROWS, rows%8==0, B%spt==0."""
    rows_total = B * N
    if rows_total <= MAX_TILE_ROWS:
        return B                                     # single grid step
    for spt in range(min(B, MAX_TILE_ROWS // max(N, 1)), 0, -1):
        if B % spt == 0 and (spt * N) % 8 == 0:
            return spt
    return B                                         # fallback: one big tile


@jax.jit
def vit_block(x, wqkv, w1t, w2t, vecs):
    B, N, D = x.shape
    assert D == HIDDEN_D
    DM = D_MLP

    seq_per_tile = _choose_seq_per_tile(B, N)
    tile_rows = seq_per_tile * N
    num_tiles = B // seq_per_tile

    x_flat = x.reshape(B * N, D)

    # Weights never change across grid steps -> single-buffer them when the
    # grid actually has more than one step (saves VMEM + per-step bookkeeping).
    wmode = pl.Buffered(1) if num_tiles > 1 else None

    kernel = functools.partial(vit_block_kernel,
                               seq_per_tile=seq_per_tile, n_tokens=N)

    out_flat = pl.pallas_call(
        kernel,
        out_shape=jax.ShapeDtypeStruct((B * N, D), jnp.float32),
        grid=(num_tiles,),
        in_specs=[
            pl.BlockSpec((tile_rows, D), lambda i: (i, 0)),                    # x slab
            pl.BlockSpec((D, 3 * D), lambda i: (0, 0), pipeline_mode=wmode),   # fused QKV
            pl.BlockSpec((D, DM), lambda i: (0, 0), pipeline_mode=wmode),      # W1^T
            pl.BlockSpec((DM, D), lambda i: (0, 0), pipeline_mode=wmode),      # W2^T
            pl.BlockSpec((8, DM), lambda i: (0, 0), pipeline_mode=wmode),      # packed vecs
        ],
        out_specs=pl.BlockSpec((tile_rows, D), lambda i: (i, 0)),
        scratch_shapes=[pltpu.VMEM((tile_rows, D), jnp.float32)],              # msa scratch
        compiler_params=pltpu.CompilerParams(
            dimension_semantics=("parallel",)),
    )(x_flat, wqkv, w1t, w2t, vecs)

    return out_flat.reshape(B, N, D)


# ------------------------- pure-JAX reference ---------------------------------
def vit_block_ref(x, p):
    def ln(t, g, b):
        mu = jnp.mean(t, axis=-1, keepdims=True)
        var = jnp.mean((t - mu) ** 2, axis=-1, keepdims=True)
        return (t - mu) / jnp.sqrt(var + LN_EPS) * g + b

    xn = ln(x, p["g1"], p["b1"])
    outs = []
    for h in range(N_HEADS):
        seq = xn[:, :, h * D_HEAD:(h + 1) * D_HEAD]
        q = seq @ p["wq"][h].T + p["bq"][h]
        k = seq @ p["wk"][h].T + p["bk"][h]
        v = seq @ p["wv"][h].T + p["bv"][h]
        s = jnp.einsum("bnd,bmd->bnm", q, k) / math.sqrt(D_HEAD)
        a = jax.nn.softmax(s, axis=-1)
        outs.append(jnp.einsum("bnm,bmd->bnd", a, v))
    out1 = x + jnp.concatenate(outs, axis=-1)
    xn2 = ln(out1, p["g2"], p["b2"])
    h1 = jax.nn.gelu(xn2 @ p["w1"].T + p["c1"], approximate=False)
    return out1 + h1 @ p["w2"].T + p["c2"]


# ------------------------------ parameters ------------------------------------
def init_params(key):
    ks = jax.random.split(key, 8)
    D, H, dh, Dm = HIDDEN_D, N_HEADS, D_HEAD, D_MLP
    s = 0.05
    return {
        "g1": jnp.ones((1, D), jnp.float32),
        "b1": jnp.zeros((1, D), jnp.float32),
        "wq": s * jax.random.normal(ks[0], (H, dh, dh), jnp.float32),
        "bq": s * jax.random.normal(ks[1], (H, 1, dh), jnp.float32),
        "wk": s * jax.random.normal(ks[2], (H, dh, dh), jnp.float32),
        "bk": s * jax.random.normal(ks[3], (H, 1, dh), jnp.float32),
        "wv": s * jax.random.normal(ks[4], (H, dh, dh), jnp.float32),
        "bv": s * jax.random.normal(ks[5], (H, 1, dh), jnp.float32),
        "w1": s * jax.random.normal(ks[6], (Dm, D), jnp.float32),
        "c1": jnp.zeros((1, Dm), jnp.float32),
        "w2": s * jax.random.normal(ks[7], (D, Dm), jnp.float32),
        "c2": jnp.zeros((1, D), jnp.float32),
        "g2": jnp.ones((1, D), jnp.float32),
        "b2": jnp.zeros((1, D), jnp.float32),
    }


if __name__ == "__main__":
    key = jax.random.PRNGKey(0)
    kx, kp = jax.random.split(key)

    B, N = 2, 8                                    # batch=2, seq=8, hidden=32
    x = jax.random.normal(kx, (B, N, HIDDEN_D), jnp.float32)
    params = init_params(kp)

    # Packing is done once, at parameter-load time (outside the jitted forward).
    wqkv, w1t, w2t, vecs = pack_params(params)

    out = jax.block_until_ready(vit_block(x, wqkv, w1t, w2t, vecs))

    # Reference at full f32 matmul precision; the kernel uses the exact softmax
    # reciprocal again, so the remaining delta is just accumulation-order /
    # transcendental implementation noise (~1e-5).  1e-3 keeps safe headroom.
    with jax.default_matmul_precision("highest"):
        ref = vit_block_ref(x, params)
    assert out.shape == (B, N, HIDDEN_D)
    assert jnp.allclose(out, ref, rtol=1e-3, atol=1e-3), "mismatch vs JAX reference"

    print("KERNEL_OK")
</pallas_src>

<mosaic_0001>
module attributes {stable_mosaic.version = 11 : i64} {
  func.func @vit_block_kernel(%arg0: i32, %arg1: memref<16x32xf32, #tpu.memory_space<vmem>>, %arg2: memref<32x96xf32, #tpu.memory_space<vmem>>, %arg3: memref<32x128xf32, #tpu.memory_space<vmem>>, %arg4: memref<128x32xf32, #tpu.memory_space<vmem>>, %arg5: memref<8x128xf32, #tpu.memory_space<vmem>>, %arg6: memref<16x32xf32, #tpu.memory_space<vmem>>, %arg7: memref<16x32xf32, #tpu.memory_space<vmem>>) attributes {dimension_semantics = [#tpu.dimension_semantics<parallel>], iteration_bounds = array<i64: 1>, scalar_prefetch = 0 : i64, scratch_operands = 1 : i64, tpu.core_type = #tpu.core_type<tc>, window_params = [{transform_indices = @transform_0, window_bounds = array<i64: 16, 32>}, {pipeline_mode = #tpu.pipeline_mode<synchronous>, transform_indices = @transform_1, window_bounds = array<i64: 32, 96>}, {pipeline_mode = #tpu.pipeline_mode<synchronous>, transform_indices = @transform_2, window_bounds = array<i64: 32, 128>}, {pipeline_mode = #tpu.pipeline_mode<synchronous>, transform_indices = @transform_3, window_bounds = array<i64: 128, 32>}, {pipeline_mode = #tpu.pipeline_mode<synchronous>, transform_indices = @transform_4, window_bounds = array<i64: 8, 128>}, {transform_indices = @transform_5, window_bounds = array<i64: 16, 32>}]} {
    %c0 = arith.constant 0 : index
    %c0_0 = arith.constant 0 : index
    %0 = vector.load %arg1[%c0, %c0_0] : memref<16x32xf32, #tpu.memory_space<vmem>>, vector<16x32xf32>
    %c0_1 = arith.constant 0 : index
    %c0_2 = arith.constant 0 : index
    %1 = vector.load %arg5[%c0_1, %c0_2] : memref<8x128xf32, #tpu.memory_space<vmem>>, vector<1x32xf32>
    %c1 = arith.constant 1 : index
    %c0_3 = arith.constant 0 : index
    %2 = vector.load %arg5[%c1, %c0_3] : memref<8x128xf32, #tpu.memory_space<vmem>>, vector<1x32xf32>
    %c2 = arith.constant 2 : index
    %c0_4 = arith.constant 0 : index
    %3 = vector.load %arg5[%c2, %c0_4] : memref<8x128xf32, #tpu.memory_space<vmem>>, vector<1x32xf32>
    %c3 = arith.constant 3 : index
    %c0_5 = arith.constant 0 : index
    %4 = vector.load %arg5[%c3, %c0_5] : memref<8x128xf32, #tpu.memory_space<vmem>>, vector<1x32xf32>
    %c4 = arith.constant 4 : index
    %c0_6 = arith.constant 0 : index
    %5 = vector.load %arg5[%c4, %c0_6] : memref<8x128xf32, #tpu.memory_space<vmem>>, vector<1x96xf32>
    %c5 = arith.constant 5 : index
    %c0_7 = arith.constant 0 : index
    %6 = vector.load %arg5[%c5, %c0_7] : memref<8x128xf32, #tpu.memory_space<vmem>>, vector<1x128xf32>
    %c6 = arith.constant 6 : index
    %c0_8 = arith.constant 0 : index
    %7 = vector.load %arg5[%c6, %c0_8] : memref<8x128xf32, #tpu.memory_space<vmem>>, vector<1x32xf32>
    %cst = arith.constant dense<0.000000e+00> : vector<16xf32>
    %8 = vector.multi_reduction <add>, %0, %cst [1] : vector<16x32xf32> to vector<16xf32>
    %9 = vector.shape_cast %8 : vector<16xf32> to vector<16x1xf32>
    %cst_9 = arith.constant 3.200000e+01 : f32
    %10 = vector.broadcast %cst_9 : f32 to vector<16x1xf32>
    %11 = arith.divf %9, %10 : vector<16x1xf32>
    %12 = vector.broadcast %11 : vector<16x1xf32> to vector<16x32xf32>
    %13 = arith.subf %0, %12 : vector<16x32xf32>
    %14 = arith.mulf %13, %13 : vector<16x32xf32>
    %cst_10 = arith.constant dense<0.000000e+00> : vector<16xf32>
    %15 = vector.multi_reduction <add>, %14, %cst_10 [1] : vector<16x32xf32> to vector<16xf32>
    %16 = vector.shape_cast %15 : vector<16xf32> to vector<16x1xf32>
    %cst_11 = arith.constant 3.200000e+01 : f32
    %17 = vector.broadcast %cst_11 : f32 to vector<16x1xf32>
    %18 = arith.divf %16, %17 : vector<16x1xf32>
    %19 = vector.broadcast %11 : vector<16x1xf32> to vector<16x32xf32>
    %20 = arith.subf %0, %19 : vector<16x32xf32>
    %cst_12 = arith.constant 9.99999974E-6 : f32
    %21 = vector.broadcast %cst_12 : f32 to vector<16x1xf32>
    %22 = arith.addf %18, %21 : vector<16x1xf32>
    %23 = math.rsqrt %22 : vector<16x1xf32>
    %24 = vector.broadcast %23 : vector<16x1xf32> to vector<16x32xf32>
    %25 = arith.mulf %20, %24 : vector<16x32xf32>
    %26 = vector.broadcast %1 : vector<1x32xf32> to vector<16x32xf32>
    %27 = arith.mulf %25, %26 : vector<16x32xf32>
    %28 = vector.broadcast %2 : vector<1x32xf32> to vector<16x32xf32>
    %29 = arith.addf %27, %28 : vector<16x32xf32>
    %c0_13 = arith.constant 0 : index
    %c0_14 = arith.constant 0 : index
    %30 = vector.load %arg2[%c0_13, %c0_14] : memref<32x96xf32, #tpu.memory_space<vmem>>, vector<32x96xf32>
    %cst_15 = arith.constant dense<0.000000e+00> : vector<16x96xf32>
    %31 = tpu.matmul %29, %30, %cst_15 {dimension_numbers = #tpu.dot_dimension_numbers<[1], [0], [0], [1], [0, 0, 1, 1], [], []>} : vector<16x32xf32>, vector<32x96xf32>, vector<16x96xf32> -> vector<16x96xf32>
    %32 = vector.broadcast %5 : vector<1x96xf32> to vector<16x96xf32>
    %33 = arith.addf %31, %32 : vector<16x96xf32>
    %34 = vector.extract_strided_slice %33 {offsets = [0, 0], sizes = [16, 16], strides = [1, 1]} : vector<16x96xf32> to vector<16x16xf32>
    %35 = vector.shape_cast %34 : vector<16x16xf32> to vector<2x8x16xf32>
    %36 = vector.extract_strided_slice %33 {offsets = [0, 32], sizes = [16, 16], strides = [1, 1]} : vector<16x96xf32> to vector<16x16xf32>
    %37 = vector.shape_cast %36 : vector<16x16xf32> to vector<2x8x16xf32>
    %38 = vector.extract_strided_slice %33 {offsets = [0, 64], sizes = [16, 16], strides = [1, 1]} : vector<16x96xf32> to vector<16x16xf32>
    %39 = vector.shape_cast %38 : vector<16x16xf32> to vector<2x8x16xf32>
    "tpu.trace_start"() <{level = 10 : i32, message = "snd,smd->snm"}> : () -> ()
    %cst_16 = arith.constant dense<0.000000e+00> : vector<2x8x8xf32>
    %40 = tpu.matmul %35, %37, %cst_16 {dimension_numbers = #tpu.dot_dimension_numbers<[2], [2], [1], [1], [0, 0, 0, 1, 1, 1], [0], [0]>} : vector<2x8x16xf32>, vector<2x8x16xf32>, vector<2x8x8xf32> -> vector<2x8x8xf32>
    "tpu.trace_stop"() : () -> ()
    %cst_17 = arith.constant dense<0xFF800000> : vector<2x8xf32>
    %41 = vector.multi_reduction <maximumf>, %40, %cst_17 [2] : vector<2x8x8xf32> to vector<2x8xf32>
    %42 = vector.shape_cast %41 : vector<2x8xf32> to vector<2x8x1xf32>
    %43 = vector.broadcast %42 : vector<2x8x1xf32> to vector<2x8x8xf32>
    %44 = arith.subf %40, %43 : vector<2x8x8xf32>
    %45 = math.exp %44 : vector<2x8x8xf32>
    %cst_18 = arith.constant dense<0.000000e+00> : vector<2x8xf32>
    %46 = vector.multi_reduction <add>, %45, %cst_18 [2] : vector<2x8x8xf32> to vector<2x8xf32>
    %47 = vector.shape_cast %46 : vector<2x8xf32> to vector<2x8x1xf32>
    %48 = vector.broadcast %47 : vector<2x8x1xf32> to vector<2x8x8xf32>
    %49 = arith.divf %45, %48 : vector<2x8x8xf32>
    "tpu.trace_start"() <{level = 10 : i32, message = "snm,smd->snd"}> : () -> ()
    %cst_19 = arith.constant dense<0.000000e+00> : vector<2x8x16xf32>
    %50 = tpu.matmul %49, %39, %cst_19 {dimension_numbers = #tpu.dot_dimension_numbers<[2], [1], [1], [2], [0, 0, 0, 1, 1, 2], [0], [0]>} : vector<2x8x8xf32>, vector<2x8x16xf32>, vector<2x8x16xf32> -> vector<2x8x16xf32>
    "tpu.trace_stop"() : () -> ()
    %51 = vector.shape_cast %50 : vector<2x8x16xf32> to vector<16x16xf32>
    %c0_20 = arith.constant 0 : index
    %c0_21 = arith.constant 0 : index
    %52 = vector.load %arg7[%c0_20, %c0_21] : memref<16x32xf32, #tpu.memory_space<vmem>>, vector<16x16xf32>
    tpu.vector_store %arg7[%c0_20, %c0_21], %51 {strides = array<i32>} : memref<16x32xf32, #tpu.memory_space<vmem>>, vector<16x16xf32>,
    %53 = vector.extract_strided_slice %33 {offsets = [0, 16], sizes = [16, 16], strides = [1, 1]} : vector<16x96xf32> to vector<16x16xf32>
    %54 = vector.shape_cast %53 : vector<16x16xf32> to vector<2x8x16xf32>
    %55 = vector.extract_strided_slice %33 {offsets = [0, 48], sizes = [16, 16], strides = [1, 1]} : vector<16x96xf32> to vector<16x16xf32>
    %56 = vector.shape_cast %55 : vector<16x16xf32> to vector<2x8x16xf32>
    %57 = vector.extract_strided_slice %33 {offsets = [0, 80], sizes = [16, 16], strides = [1, 1]} : vector<16x96xf32> to vector<16x16xf32>
    %58 = vector.shape_cast %57 : vector<16x16xf32> to vector<2x8x16xf32>
    "tpu.trace_start"() <{level = 10 : i32, message = "snd,smd->snm"}> : () -> ()
    %cst_22 = arith.constant dense<0.000000e+00> : vector<2x8x8xf32>
    %59 = tpu.matmul %54, %56, %cst_22 {dimension_numbers = #tpu.dot_dimension_numbers<[2], [2], [1], [1], [0, 0, 0, 1, 1, 1], [0], [0]>} : vector<2x8x16xf32>, vector<2x8x16xf32>, vector<2x8x8xf32> -> vector<2x8x8xf32>
    "tpu.trace_stop"() : () -> ()
    %cst_23 = arith.constant dense<0xFF800000> : vector<2x8xf32>
    %60 = vector.multi_reduction <maximumf>, %59, %cst_23 [2] : vector<2x8x8xf32> to vector<2x8xf32>
    %61 = vector.shape_cast %60 : vector<2x8xf32> to vector<2x8x1xf32>
    %62 = vector.broadcast %61 : vector<2x8x1xf32> to vector<2x8x8xf32>
    %63 = arith.subf %59, %62 : vector<2x8x8xf32>
    %64 = math.exp %63 : vector<2x8x8xf32>
    %cst_24 = arith.constant dense<0.000000e+00> : vector<2x8xf32>
    %65 = vector.multi_reduction <add>, %64, %cst_24 [2] : vector<2x8x8xf32> to vector<2x8xf32>
    %66 = vector.shape_cast %65 : vector<2x8xf32> to vector<2x8x1xf32>
    %67 = vector.broadcast %66 : vector<2x8x1xf32> to vector<2x8x8xf32>
    %68 = arith.divf %64, %67 : vector<2x8x8xf32>
    "tpu.trace_start"() <{level = 10 : i32, message = "snm,smd->snd"}> : () -> ()
    %cst_25 = arith.constant dense<0.000000e+00> : vector<2x8x16xf32>
    %69 = tpu.matmul %68, %58, %cst_25 {dimension_numbers = #tpu.dot_dimension_numbers<[2], [1], [1], [2], [0, 0, 0, 1, 1, 2], [0], [0]>} : vector<2x8x8xf32>, vector<2x8x16xf32>, vector<2x8x16xf32> -> vector<2x8x16xf32>
    "tpu.trace_stop"() : () -> ()
    %70 = vector.shape_cast %69 : vector<2x8x16xf32> to vector<16x16xf32>
    %c0_26 = arith.constant 0 : index
    %c16 = arith.constant 16 : index
    %71 = vector.load %arg7[%c0_26, %c16] : memref<16x32xf32, #tpu.memory_space<vmem>>, vector<16x16xf32>
    tpu.vector_store %arg7[%c0_26, %c16], %70 {strides = array<i32>} : memref<16x32xf32, #tpu.memory_space<vmem>>, vector<16x16xf32>,
    %c0_27 = arith.constant 0 : index
    %c0_28 = arith.constant 0 : index
    %72 = vector.load %arg7[%c0_27, %c0_28] : memref<16x32xf32, #tpu.memory_space<vmem>>, vector<16x32xf32>
    %73 = arith.addf %0, %72 : vector<16x32xf32>
    %cst_29 = arith.constant dense<0.000000e+00> : vector<16xf32>
    %74 = vector.multi_reduction <add>, %73, %cst_29 [1] : vector<16x32xf32> to vector<16xf32>
    %75 = vector.shape_cast %74 : vector<16xf32> to vector<16x1xf32>
    %cst_30 = arith.constant 3.200000e+01 : f32
    %76 = vector.broadcast %cst_30 : f32 to vector<16x1xf32>
    %77 = arith.divf %75, %76 : vector<16x1xf32>
    %78 = vector.broadcast %77 : vector<16x1xf32> to vector<16x32xf32>
    %79 = arith.subf %73, %78 : vector<16x32xf32>
    %80 = arith.mulf %79, %79 : vector<16x32xf32>
    %cst_31 = arith.constant dense<0.000000e+00> : vector<16xf32>
    %81 = vector.multi_reduction <add>, %80, %cst_31 [1] : vector<16x32xf32> to vector<16xf32>
    %82 = vector.shape_cast %81 : vector<16xf32> to vector<16x1xf32>
    %cst_32 = arith.constant 3.200000e+01 : f32
    %83 = vector.broadcast %cst_32 : f32 to vector<16x1xf32>
    %84 = arith.divf %82, %83 : vector<16x1xf32>
    %85 = vector.broadcast %77 : vector<16x1xf32> to vector<16x32xf32>
    %86 = arith.subf %73, %85 : vector<16x32xf32>
    %cst_33 = arith.constant 9.99999974E-6 : f32
    %87 = vector.broadcast %cst_33 : f32 to vector<16x1xf32>
    %88 = arith.addf %84, %87 : vector<16x1xf32>
    %89 = math.rsqrt %88 : vector<16x1xf32>
    %90 = vector.broadcast %89 : vector<16x1xf32> to vector<16x32xf32>
    %91 = arith.mulf %86, %90 : vector<16x32xf32>
    %92 = vector.broadcast %3 : vector<1x32xf32> to vector<16x32xf32>
    %93 = arith.mulf %91, %92 : vector<16x32xf32>
    %94 = vector.broadcast %4 : vector<1x32xf32> to vector<16x32xf32>
    %95 = arith.addf %93, %94 : vector<16x32xf32>
    %c0_34 = arith.constant 0 : index
    %c0_35 = arith.constant 0 : index
    %96 = vector.load %arg3[%c0_34, %c0_35] : memref<32x128xf32, #tpu.memory_space<vmem>>, vector<32x128xf32>
    %cst_36 = arith.constant dense<0.000000e+00> : vector<16x128xf32>
    %97 = tpu.matmul %95, %96, %cst_36 {dimension_numbers = #tpu.dot_dimension_numbers<[1], [0], [0], [1], [0, 0, 1, 1], [], []>} : vector<16x32xf32>, vector<32x128xf32>, vector<16x128xf32> -> vector<16x128xf32>
    %98 = vector.broadcast %6 : vector<1x128xf32> to vector<16x128xf32>
    %99 = arith.addf %97, %98 : vector<16x128xf32>
    %cst_37 = arith.constant 5.000000e-01 : f32
    %100 = vector.broadcast %cst_37 : f32 to vector<16x128xf32>
    %101 = arith.mulf %100, %99 : vector<16x128xf32>
    %cst_38 = arith.constant 0.707106769 : f32
    %102 = vector.broadcast %cst_38 : f32 to vector<16x128xf32>
    %103 = arith.mulf %99, %102 : vector<16x128xf32>
    %104 = math.erf %103 : vector<16x128xf32>
    %cst_39 = arith.constant 1.000000e+00 : f32
    %105 = vector.broadcast %cst_39 : f32 to vector<16x128xf32>
    %106 = arith.addf %105, %104 : vector<16x128xf32>
    %107 = arith.mulf %101, %106 : vector<16x128xf32>
    %c0_40 = arith.constant 0 : index
    %c0_41 = arith.constant 0 : index
    %108 = vector.load %arg4[%c0_40, %c0_41] : memref<128x32xf32, #tpu.memory_space<vmem>>, vector<128x32xf32>
    %cst_42 = arith.constant dense<0.000000e+00> : vector<16x32xf32>
    %109 = tpu.matmul %107, %108, %cst_42 {dimension_numbers = #tpu.dot_dimension_numbers<[1], [0], [0], [1], [0, 0, 1, 1], [], []>} : vector<16x128xf32>, vector<128x32xf32>, vector<16x32xf32> -> vector<16x32xf32>
    %110 = vector.broadcast %7 : vector<1x32xf32> to vector<16x32xf32>
    %111 = arith.addf %109, %110 : vector<16x32xf32>
    %112 = arith.addf %73, %111 : vector<16x32xf32>
    %c0_43 = arith.constant 0 : index
    %c0_44 = arith.constant 0 : index
    %113 = vector.load %arg6[%c0_43, %c0_44] : memref<16x32xf32, #tpu.memory_space<vmem>>, vector<16x32xf32>
    tpu.vector_store %arg6[%c0_43, %c0_44], %112 {strides = array<i32>} : memref<16x32xf32, #tpu.memory_space<vmem>>, vector<16x32xf32>,
    return
  }
  func.func @transform_0(%arg0: i32) -> (i32, i32) {
    %c0_i32 = arith.constant 0 : i32
    %c0_i32_0 = arith.constant 0 : i32
    return %arg0, %c0_i32 : i32, i32
  }
  func.func @transform_1(%arg0: i32) -> (i32, i32) {
    %c0_i32 = arith.constant 0 : i32
    %c0_i32_0 = arith.constant 0 : i32
    %c0_i32_1 = arith.constant 0 : i32
    return %c0_i32, %c0_i32_0 : i32, i32
  }
  func.func @transform_2(%arg0: i32) -> (i32, i32) {
    %c0_i32 = arith.constant 0 : i32
    %c0_i32_0 = arith.constant 0 : i32
    %c0_i32_1 = arith.constant 0 : i32
    return %c0_i32, %c0_i32_0 : i32, i32
  }
  func.func @transform_3(%arg0: i32) -> (i32, i32) {
    %c0_i32 = arith.constant 0 : i32
    %c0_i32_0 = arith.constant 0 : i32
    %c0_i32_1 = arith.constant 0 : i32
    return %c0_i32, %c0_i32_0 : i32, i32
  }
  func.func @transform_4(%arg0: i32) -> (i32, i32) {
    %c0_i32 = arith.constant 0 : i32
    %c0_i32_0 = arith.constant 0 : i32
    %c0_i32_1 = arith.constant 0 : i32
    return %c0_i32, %c0_i32_0 : i32, i32
  }
  func.func @transform_5(%arg0: i32) -> (i32, i32) {
    %c0_i32 = arith.constant 0 : i32
    %c0_i32_0 = arith.constant 0 : i32
    return %arg0, %c0_i32 : i32, i32
  }
}

</mosaic_0001>

<bundles_post_ra>
// kernel: vit_block.1
= control target key start
LH: loop header
LB: loop body
LE: loop exit
PB: predicated region body
PF: predicated region fallthrough
CT: control target
= control target key end

     0   :  { %vm30_vm0 = vcmask 261120   ;;  %s1613_s0 = inlined_call_operand.vmem [shape: f32[16,32], index: 0, kind: input, shape index: {}]   ;;  %s1614_s1 = inlined_call_operand.vmem [shape: f32[32,96], index: 1, kind: input, shape index: {}]   ;;  %s1615_s2 = inlined_call_operand.vmem [shape: f32[32,128], index: 2, kind: input, shape index: {}]   ;;  %s1616_s3 = inlined_call_operand.vmem [shape: f32[128,32], index: 3, kind: input, shape index: {}]   ;;  %s1617_s4 = inlined_call_operand.vmem [shape: f32[8,128], index: 4, kind: input, shape index: {}]   ;;  %s1618_s5 = inlined_call_operand.hbm [shape: f32[16,32], index: 5, kind: output, shape index: {}]  }
   0x1   :  { %v1409_v0 = vld [vmem:[%s1613_s0] sm:$0xff]  ;;  %v1414_v1 = vld [vmem:[%s1613_s0 + $0x8] sm:$0xff] }
   0x2   :  { %10 = vsyncpa [#allocation4], 0  ;;  %v31_v2 = vsel %vm30_vm0, %v1409_v0, 0.0  ;;  %v34_v3 = vsel %vm30_vm0, %v1414_v1, 0.0  ;;  %v70_v14 = vld [vmem:[%s1614_s1] sm:$0xff]  ;;  %v71_v15 = vld [vmem:[%s1614_s1 + $0x8] sm:$0xff] }
   0x3   :  { %32 = vadd.xlane.f32.xlu0 %v31_v2  ;;  %v72_v16 = vld [vmem:[%s1614_s1 + $0x10] sm:$0xff]  ;;  %v1254_v17 = vpack.c.bf16 %v71_v15, %v70_v14  ;;  %v73_v18 = vld [vmem:[%s1614_s1 + $0x18] sm:$0xff]  ;;  %v1088_v27 = vld [vmem:[%s1617_s4] ss:$0 sm:$0xff]  ;;  %v1365_v36 = vmov 0.0   ;;  %vm1366_vm1 = vmmov 0  }
   0x4   :  { %v1258_v19 = vpack.c.bf16 %v73_v18, %v72_v16  ;;  %v1089_v29 = vld [vmem:[%s1617_s4 + $0x1] ss:$0 sm:$0xff]  ;;  %1193 = vmatprep.subr.mxu1 %v1365_v36  ;;  %1195 = vmatprep.mubr.msk.f32.mxu1 %vm1366_vm1, %v1365_v36  ;;  %v1090_v37 = vld [vmem:[%s1617_s4 + $0x4] ss:$0 sm:$0xff]  ;;  %s1367_s9 = smov 96   ;;  %vm162_vm2 = vcmask 130048  }
   0x5   :  { %1255 = vmatprep.subr.bf16.mxu0 %v1254_v17  ;;  %vm314_vm3 = vcmask 64512   ;;  %s1368_s10 = smov 64   ;;  %s1369_s11 = smov 80   ;;  %vm829_vm4 = vcmask 261248  }
   0x6   :  { %1257 = vmatpush3.bf16.msra.mxu0 %v1254_v17  ;;  %s1370_s12 = smov 112   ;;  %s1371_s13 = smov 48  }
   0x7   :  { %35 = vadd.xlane.f32.xlu0 %v34_v3  ;;  %1259 = vmatprep.subr.bf16.mxu0 %v1258_v19  ;;  %s1372_s14 = smov 16   ;;  %s1373_s6 = smov [#allocation3]  }
   0x8   :  { %s1077_s7 = sshll.u32 %s1373_s6, 4  ;;  %s1078_s7 = int_to_ptr.vmem [resolvable:$true] %s1077_s7 }
   0x9   :  { %s1341_s8 = scalar_lea.vmem %s1078_s7, 256  ;;  %p1346_p1 = scmp.lt.s32.totalorder %s1078_s7, %s1078_s7 }
   0xa   :  { %1261 = vmatpush3.bf16.msra.mxu0 %v1258_v19  ;;  %p1342_p0 = scmp.ne.s32.totalorder %s1078_s7, %s1341_s8  ;;  %p1347_p2 = scmp.lt.s32.totalorder %s1341_s8, %s1341_s8 }
   0xb   :  { %1168 = vmatprep.subr.mxu0 %v1365_v36 }
   0xc   :  { %p1348_p3 = por %p1347_p2, %p1346_p1 }
   0xe   :  { %p1349_p4 = pnand %p1348_p3, %p1342_p0 }
  0x90   :  { %v33_v4 = vpop.xlane.xlu0 %32 }
  0x91   :  { %v38_v5 = vmul.f32 0.03125, %v33_v4 }
  0x93   :  { %v40_v6 = vsub.f32 %v1409_v0, %v38_v5 }
  0x94   :  { %v36_v7 = vpop.xlane.xlu0 %35 }
  0x95   :  { %v39_v8 = vmul.f32 0.03125, %v36_v7  ;;  %v42_v9 = vmul.f32 %v40_v6, %v40_v6 }
  0x97   :  { %v41_v10 = vsub.f32 %v1414_v1, %v39_v8  ;;  %v44_v11 = vsel %vm30_vm0, %v42_v9, 0.0 }
  0x98   :  { %45 = vadd.xlane.f32.xlu1 %v44_v11 }
  0x99   :  { %v43_v12 = vmul.f32 %v41_v10, %v41_v10 }
  0x9b   :  { %v47_v13 = vsel %vm30_vm0, %v43_v12, 0.0 }
  0x9c   :  { %48 = vadd.xlane.f32.xlu1 %v47_v13 }
 0x125   :  { %v46_v20 = vpop.xlane.xlu1 %45 }
 0x126   :  { %v50_v21 = vmul.f32 0.03125, %v46_v20 }
 0x128   :  { %v52_v22 = vadd.f32 1e-05, %v50_v21 }
 0x129   :  { %v49_v23 = vpop.xlane.xlu1 %48 }
 0x12a   :  { %1313 = vrsqrt.f32 %v52_v22  ;;  %v51_v24 = vmul.f32 0.03125, %v49_v23 }
 0x12c   :  { %v53_v25 = vadd.f32 1e-05, %v51_v24 }
 0x12e   :  { %1315 = vrsqrt.f32 %v53_v25 }
 0x134   :  { %v1314_v26 = vpop.eup %1313 }
 0x135   :  { %v56_v28 = vmul.f32 %v1314_v26, %v40_v6 }
 0x137   :  { %v62_v30 = vmul.f32 %v1088_v27, %v56_v28 }
 0x138   :  { %v1316_v31 = vpop.eup %1315 }
 0x139   :  { %v57_v32 = vmul.f32 %v1316_v31, %v41_v10  ;;  %v68_v33 = vadd.f32 %v1089_v29, %v62_v30 }
 0x13b   :  { %v63_v34 = vmul.f32 %v1088_v27, %v57_v32  ;;  %1165 = vmatprep.mubr.msk.f32.mxu0 %vm30_vm0, %v68_v33 }
 0x13d   :  { %v69_v35 = vadd.f32 %v1089_v29, %v63_v34 }
 0x13f   :  { %1166 = vmatmul.mubr.msk.f32.vlgmr.msra.gmra.mrb[0].mxu0 %vm30_vm0, %v69_v35 }
 0x140   :  { %1170 = vmatprep.mubr.msk.f32.mxu0 %vm1366_vm1, %v1365_v36 }
 0x212   :  { %v1167_v38 = vpop.f32.mrb[0].mxu0 }
 0x213   :  { %v1453_v39 = vadd.f32 %v1167_v38, %v1090_v37  ;;  %v150_v40 = vpop.f32.mrb[1].mxu0 }
 0x214   :  { %v1455_v41 = vadd.f32 %v1090_v37, %v150_v40 }
 0x215   :  { %238 = vrot.lane.b32.xlu1 %v1453_v39, %s1367_s9 }
 0x216   :  { %160 = vrot.lane.b32.xlu0 %v1455_v41, %s1367_s9 }
 0x287   :  { %v239_v43 = vpop.permute.xlu1 %238 }
 0x288   :  { %v161_v42 = vpop.permute.xlu0 %160 }
 0x289   :  { %1169 = vmatpush3.xpose.msk.msra.mxu0 %vm162_vm2, %v161_v42 }
 0x28a   :  { %1173 = vmatprep.subr.mxu0 %v1365_v36 }
 0x28c   :  { %1171 = vmatmul.mubr.msk.f32.vlgmr.msra.gmra.mrb[2].mxu0 %vm162_vm2, %v1455_v41 }
 0x28d   :  { %1174 = vmatpush3.xpose.msk.msra.mxu0 %vm162_vm2, %v239_v43  ;;  %1175 = vmatprep.mubr.msk.f32.mxu0 %vm1366_vm1, %v1365_v36 }
 0x28e   :  { %1178 = vmatprep.subr.mxu0 %v1365_v36 }
 0x290   :  { %1176 = vmatmul.mubr.msk.f32.vlgmr.msra.gmra.mrb[4].mxu0 %vm162_vm2, %v1453_v39 }
 0x291   :  { %1180 = vmatprep.mubr.msk.f32.mxu0 %vm1366_vm1, %v1365_v36 }
 0x35f   :  { %v233_v44 = vpop.f32.mrb[2].mxu0 }
 0x360   :  { %v1172_v45 = vpop.f32.mrb[3].mxu0  ;;  %v315_v46 = vsel %vm314_vm3, %v233_v44, -inf }
 0x361   :  { %316 = vmax.xlane.f32.xlu1 %v315_v46 }
 0x363   :  { %v310_v47 = vpop.f32.mrb[4].mxu0 }
 0x364   :  { %v1177_v48 = vpop.f32.mrb[5].mxu0  ;;  %v318_v49 = vsel %vm314_vm3, %v310_v47, -inf }
 0x365   :  { %319 = vmax.xlane.f32.xlu0 %v318_v49 }
 0x372   :  { %413 = vrot.lane.b32.xlu1 %v1453_v39, %s1368_s10 }
 0x376   :  { %493 = vrot.lane.b32.xlu1 %v1455_v41, %s1369_s11 }
 0x37a   :  { %571 = vrot.lane.b32.xlu1 %v1453_v39, %s1369_s11 }
 0x3ee   :  { %v317_v50 = vpop.xlane.xlu1 %316 }
 0x3ef   :  { %v321_v51 = vsub.f32 %v233_v44, %v317_v50 }
 0x3f1   :  { %v323_v52 = vmul.f32 1.442695, %v321_v51 }
 0x3f2   :  { %v414_v53 = vpop.permute.xlu1 %413  ;;  %v320_v54 = vpop.xlane.xlu0 %319 }
 0x3f3   :  { %1317 = vpow2.f32 %v323_v52  ;;  %v322_v55 = vsub.f32 %v310_v47, %v320_v54 }
 0x3f5   :  { %v325_v56 = vmul.f32 1.442695, %v322_v55 }
 0x3f6   :  { %v494_v57 = vpop.permute.xlu1 %493 }
 0x3f7   :  { %1319 = vpow2.f32 %v325_v56 }
 0x3fa   :  { %v572_v58 = vpop.permute.xlu1 %571 }
 0x3fb   :  { %1194 = vmatpush3.xpose.msk.msra.mxu1 %vm162_vm2, %v572_v58  ;;  %v874_v58 = vld [vmem:[%s1615_s2] sm:$0xff] }
 0x3fc   :  { %1203 = vmatprep.subr.mxu1 %v1365_v36 }
 0x3fd   :  { %v1318_v59 = vpop.eup %1317 }
 0x3fe   :  { %v327_v60 = vsel %vm314_vm3, %v1318_v59, 0.0 }
 0x3ff   :  { %328 = vadd.xlane.f32.xlu0 %v327_v60 }
 0x401   :  { %v1320_v61 = vpop.eup %1319 }
 0x402   :  { %v330_v62 = vsel %vm314_vm3, %v1320_v61, 0.0 }
 0x403   :  { %331 = vadd.xlane.f32.xlu1 %v330_v62  ;;  %v877_v62 = vld [vmem:[%s1615_s2 + $0x18] sm:$0xff] }
 0x414   :  { %569 = vrot.lane.b32.xlu1 %v1453_v39, %s1370_s12 }
 0x415   :  { %337 = vrot.lane.b32.xlu0 %v1455_v41, %s1368_s10 }
 0x419   :  { %491 = vrot.lane.b32.xlu0 %v1455_v41, %s1370_s12 }
 0x48c   :  { %v329_v63 = vpop.xlane.xlu0 %328 }
 0x48d   :  { %1321 = vrcp.f32 %v329_v63 }
 0x490   :  { %v332_v2 = vpop.xlane.xlu1 %331  ;;  %v338_v3 = vpop.permute.xlu0 %337 }
 0x491   :  { %1323 = vrcp.f32 %v332_v2  ;;  %1179 = vmatpush3.msra.mxu0 %v338_v3  ;;  %v973_v2 = vld [vmem:[%s1616_s3] sm:$0xff]  ;;  %v974_v3 = vld [vmem:[%s1616_s3 + $0x8] sm:$0xff] }
 0x492   :  { %1183 = vmatprep.subr.mxu0 %v1365_v36 }
 0x494   :  { %v570_v4 = vpop.permute.xlu1 %569  ;;  %v492_v9 = vpop.permute.xlu0 %491 }
 0x495   :  { %1196 = vmatmul.mubr.msk.f32.vlgmr.msra.gmra.mrb[0].mxu1 %vm162_vm2, %v570_v4  ;;  %v975_v4 = vld [vmem:[%s1616_s3 + $0x10] sm:$0xff] }
 0x496   :  { %1205 = vmatprep.mubr.msk.f32.mxu1 %vm1366_vm1, %v1365_v36 }
 0x497   :  { %v1322_v5 = vpop.eup %1321 }
 0x498   :  { %v334_v6 = vmul.f32 %v1322_v5, %v1318_v59  ;;  %v875_v59 = vld [vmem:[%s1615_s2 + $0x8] sm:$0xff]  ;;  %v1270_v5 = vpack.c.bf16 %v974_v3, %v973_v2 }
 0x499   :  { %v1262_v60 = vpack.c.bf16 %v875_v59, %v874_v58 }
 0x49a   :  { %1181 = vmatmul.mubr.msk.f32.vlgmr.msra.gmra.mrb[6].mxu0 %vm314_vm3, %v334_v6  ;;  %v976_v6 = vld [vmem:[%s1616_s3 + $0x18] sm:$0xff] }
 0x49b   :  { %v1324_v7 = vpop.eup %1323  ;;  %1184 = vmatpush3.msra.mxu0 %v414_v53  ;;  %1185 = vmatprep.mubr.msk.f32.mxu0 %vm1366_vm1, %v1365_v36 }
 0x49c   :  { %v336_v8 = vmul.f32 %v1324_v7, %v1320_v61  ;;  %1188 = vmatprep.subr.mxu0 %v1365_v36  ;;  %v876_v61 = vld [vmem:[%s1615_s2 + $0x10] sm:$0xff]  ;;  %v1274_v7 = vpack.c.bf16 %v976_v6, %v975_v4 }
 0x49d   :  { %v1266_v63 = vpack.c.bf16 %v877_v62, %v876_v61 }
 0x49e   :  { %1186 = vmatmul.mubr.msk.f32.vlgmr.msra.gmra.mrb[8].mxu0 %vm314_vm3, %v336_v8  ;;  %v977_v8 = vld [vmem:[%s1616_s3 + $0x20] sm:$0xff] }
 0x49f   :  { %1190 = vmatprep.mubr.msk.f32.mxu0 %vm1366_vm1, %v1365_v36 }
 0x4a2   :  { %1189 = vmatpush3.xpose.msk.msra.mxu0 %vm162_vm2, %v494_v57 }
 0x4a3   :  { %1198 = vmatprep.subr.mxu0 %v1365_v36 }
 0x4a5   :  { %1191 = vmatmul.mubr.msk.f32.vlgmr.msra.gmra.mrb[10].mxu0 %vm162_vm2, %v492_v9  ;;  %v978_v9 = vld [vmem:[%s1616_s3 + $0x28] sm:$0xff] }
 0x4a6   :  { %1200 = vmatprep.mubr.msk.f32.mxu0 %vm1366_vm1, %v1365_v36 }
 0x568   :  { %v643_v10 = vpop.f32.mrb[0].mxu1 }
 0x569   :  { %v1197_v11 = vpop.f32.mrb[1].mxu1  ;;  %v650_v12 = vsel %vm314_vm3, %v643_v10, -inf }
 0x56a   :  { %651 = vmax.xlane.f32.xlu1 %v650_v12 }
 0x56d   :  { %v409_v13 = vpop.f32.mrb[6].mxu0 }
 0x56e   :  { %489 = vst.msk [vmem:[#allocation2] sm:$0xff] %vm162_vm2, %v409_v13  ;;  %v1182_v14 = vpop.f32.mrb[7].mxu0 }
 0x571   :  { %v485_v15 = vpop.f32.mrb[8].mxu0 }
 0x572   :  { %490 = vst.msk [vmem:[#allocation2 + $0x8] sm:$0xff] %vm162_vm2, %v485_v15  ;;  %v1187_v16 = vpop.f32.mrb[9].mxu0 }
 0x578   :  { %v565_v17 = vpop.f32.mrb[10].mxu0 }
 0x579   :  { %v1192_v18 = vpop.f32.mrb[11].mxu0  ;;  %v647_v19 = vsel %vm314_vm3, %v565_v17, -inf }
 0x57a   :  { %648 = vmax.xlane.f32.xlu0 %v647_v19  ;;  %v1105_v18 = vld [vmem:[%s1617_s4 + $0x2] ss:$0 sm:$0xff] }
 0x57b   :  { %745 = vrot.lane.b32.xlu1 %v1453_v39, %s1371_s13 }
 0x5f7   :  { %v652_v20 = vpop.xlane.xlu1 %651 }
 0x5f8   :  { %v654_v21 = vsub.f32 %v643_v10, %v652_v20  ;;  %v1278_v10 = vpack.c.bf16 %v978_v9, %v977_v8  ;;  %v1106_v20 = vld [vmem:[%s1617_s4 + $0x3] ss:$0 sm:$0xff] }
 0x5fa   :  { %v657_v22 = vmul.f32 1.442695, %v654_v21 }
 0x5fb   :  { %v746_v23 = vpop.permute.xlu1 %745 }
 0x5fc   :  { %1325 = vpow2.f32 %v657_v22  ;;  %1204 = vmatpush3.msra.mxu1 %v746_v23 }
 0x5fd   :  { %1271 = vmatprep.subr.bf16.mxu1 %v1270_v5 }
 0x606   :  { %v1326_v24 = vpop.eup %1325 }
 0x607   :  { %v649_v25 = vpop.xlane.xlu0 %648  ;;  %v662_v26 = vsel %vm314_vm3, %v1326_v24, 0.0 }
 0x608   :  { %v653_v27 = vsub.f32 %v565_v17, %v649_v25  ;;  %663 = vadd.xlane.f32.xlu0 %v662_v26 }
 0x60a   :  { %v655_v28 = vmul.f32 1.442695, %v653_v27  ;;  %v979_v27 = vld [vmem:[%s1616_s3 + $0x30] sm:$0xff] }
 0x60c   :  { %1327 = vpow2.f32 %v655_v28  ;;  %v980_v28 = vld [vmem:[%s1616_s3 + $0x38] sm:$0xff] }
 0x616   :  { %v1328_v29 = vpop.eup %1327 }
 0x617   :  { %v659_v30 = vsel %vm314_vm3, %v1328_v29, 0.0 }
 0x618   :  { %660 = vadd.xlane.f32.xlu0 %v659_v30  ;;  %v981_v30 = vld [vmem:[%s1616_s3 + $0x40] sm:$0xff] }
 0x62e   :  { %669 = vrot.lane.b32.xlu0 %v1455_v41, %s1371_s13 }
 0x695   :  { %v664_v31 = vpop.xlane.xlu0 %663 }
 0x696   :  { %1329 = vrcp.f32 %v664_v31  ;;  %v982_v31 = vld [vmem:[%s1616_s3 + $0x48] sm:$0xff] }
 0x6a0   :  { %v1330_v32 = vpop.eup %1329 }
 0x6a1   :  { %v668_v33 = vmul.f32 %v1330_v32, %v1326_v24  ;;  %v1286_v32 = vpack.c.bf16 %v982_v31, %v981_v30 }
 0x6a3   :  { %1206 = vmatmul.mubr.msk.f32.vlgmr.msra.gmra.mrb[2].mxu1 %vm314_vm3, %v668_v33  ;;  %v983_v33 = vld [vmem:[%s1616_s3 + $0x50] sm:$0xff] }
 0x6a4   :  { %1273 = vmatpush3.bf16.msra.mxu1 %v1270_v5 }
 0x6a5   :  { %v661_v34 = vpop.xlane.xlu0 %660  ;;  %1275 = vmatprep.subr.bf16.mxu1 %v1274_v7 }
 0x6a6   :  { %1331 = vrcp.f32 %v661_v34  ;;  %v984_v34 = vld [vmem:[%s1616_s3 + $0x58] sm:$0xff] }
 0x6a8   :  { %1277 = vmatpush3.bf16.msra.mxu1 %v1274_v7 }
 0x6a9   :  { %v670_v35 = vpop.permute.xlu0 %669  ;;  %1279 = vmatprep.subr.bf16.mxu1 %v1278_v10 }
 0x6aa   :  { %1199 = vmatpush3.msra.mxu0 %v670_v35  ;;  %v1290_v35 = vpack.c.bf16 %v984_v34, %v983_v33 }
 0x6ab   :  { %1263 = vmatprep.subr.bf16.mxu0 %v1262_v60 }
 0x6ac   :  { %1281 = vmatpush3.bf16.msra.mxu1 %v1278_v10 }
 0x6b0   :  { %v1332_v36 = vpop.eup %1331 }
 0x6b1   :  { %v666_v37 = vmul.f32 %v1332_v36, %v1328_v29  ;;  %v1282_v29 = vpack.c.bf16 %v980_v28, %v979_v27  ;;  %v985_v36 = vld [vmem:[%s1616_s3 + $0x60] sm:$0xff] }
 0x6b3   :  { %1201 = vmatmul.mubr.msk.f32.vlgmr.msra.gmra.mrb[12].mxu0 %vm314_vm3, %v666_v37  ;;  %1283 = vmatprep.subr.bf16.mxu1 %v1282_v29  ;;  %v986_v37 = vld [vmem:[%s1616_s3 + $0x68] sm:$0xff] }
 0x6b4   :  { %1265 = vmatpush3.bf16.msra.mxu0 %v1262_v60  ;;  %1285 = vmatpush3.bf16.msra.mxu1 %v1282_v29 }
 0x6b5   :  { %1267 = vmatprep.subr.bf16.mxu0 %v1266_v63  ;;  %1287 = vmatprep.subr.bf16.mxu1 %v1286_v32 }
 0x6b8   :  { %1269 = vmatpush3.bf16.msra.mxu0 %v1266_v63  ;;  %1289 = vmatpush3.bf16.msra.mxu1 %v1286_v32 }
 0x6b9   :  { %1291 = vmatprep.subr.bf16.mxu1 %v1290_v35 }
 0x6bc   :  { %1293 = vmatpush3.bf16.msra.mxu1 %v1290_v35 }
 0x776   :  { %v817_v38 = vpop.f32.mrb[2].mxu1 }
 0x777   :  { %v1207_v39 = vpop.f32.mrb[3].mxu1 }
 0x778   :  { %v987_v39 = vld [vmem:[%s1616_s3 + $0x70] sm:$0xff] }
 0x786   :  { %v741_v40 = vpop.f32.mrb[12].mxu0 }
 0x787   :  { %823 = vrot.lane.b32.xlu1 %v741_v40, %s1372_s14  ;;  %v1202_v41 = vpop.f32.mrb[13].mxu0  ;;  %v988_v40 = vld [vmem:[%s1616_s3 + $0x78] sm:$0xff] }
 0x788   :  { %v1298_v41 = vpack.c.bf16 %v988_v40, %v987_v39 }
 0x78b   :  { %825 = vrot.lane.b32.xlu1 %v817_v38, %s1372_s14  ;;  %v1294_v38 = vpack.c.bf16 %v986_v37, %v985_v36 }
 0x78d   :  { %1295 = vmatprep.subr.bf16.mxu1 %v1294_v38 }
 0x78e   :  { %1297 = vmatpush3.bf16.msra.mxu1 %v1294_v38 }
 0x78f   :  { %1299 = vmatprep.subr.bf16.mxu1 %v1298_v41 }
 0x792   :  { %1301 = vmatpush3.bf16.msra.mxu1 %v1298_v41 }
 0x7f9   :  { %v824_v42 = vpop.permute.xlu1 %823 }
 0x7fa   :  { %830 = vst.msk [vmem:[#allocation2] sm:$0xff] %vm829_vm4, %v824_v42  ;;  %v1107_v42 = vld [vmem:[%s1617_s4 + $0x5] ss:$0 sm:$0xff] }
 0x7fd   :  { %v826_v43 = vpop.permute.xlu1 %825 }
 0x7fe   :  { %831 = vst.msk [vmem:[#allocation2 + $0x8] sm:$0xff] %vm829_vm4, %v826_v43 }
 0x801   :  { %v832_v44 = vld [vmem:[#allocation2] sm:$0xff] }
 0x802   :  { %v1510_v45 = vadd.f32 %v832_v44, %v1409_v0 }
 0x804   :  { %v836_v46 = vsel %vm30_vm0, %v1510_v45, 0.0 }
 0x805   :  { %837 = vadd.xlane.f32.xlu0 %v836_v46  ;;  %v833_v47 = vld [vmem:[#allocation2 + $0x8] sm:$0xff] }
 0x806   :  { %v1515_v48 = vadd.f32 %v833_v47, %v1414_v1 }
 0x808   :  { %v839_v49 = vsel %vm30_vm0, %v1515_v48, 0.0 }
 0x809   :  { %840 = vadd.xlane.f32.xlu1 %v839_v49 }
 0x892   :  { %v838_v50 = vpop.xlane.xlu0 %837 }
 0x893   :  { %v842_v51 = vmul.f32 0.03125, %v838_v50 }
 0x895   :  { %v844_v52 = vsub.f32 %v1510_v45, %v842_v51 }
 0x896   :  { %v841_v53 = vpop.xlane.xlu1 %840 }
 0x897   :  { %v843_v54 = vmul.f32 0.03125, %v841_v53  ;;  %v846_v0 = vmul.f32 %v844_v52, %v844_v52 }
 0x899   :  { %v845_v55 = vsub.f32 %v1515_v48, %v843_v54  ;;  %v848_v56 = vsel %vm30_vm0, %v846_v0, 0.0 }
 0x89a   :  { %849 = vadd.xlane.f32.xlu0 %v848_v56 }
 0x89b   :  { %v847_v57 = vmul.f32 %v845_v55, %v845_v55 }
 0x89d   :  { %v851_v1 = vsel %vm30_vm0, %v847_v57, 0.0 }
 0x89e   :  { %852 = vadd.xlane.f32.xlu0 %v851_v1  ;;  %v1110_v1 = vld [vmem:[%s1617_s4 + $0x6] ss:$0 sm:$0xff] }
 0x927   :  { %v850_v11 = vpop.xlane.xlu0 %849 }
 0x928   :  { %v854_v12 = vmul.f32 0.03125, %v850_v11 }
 0x92a   :  { %v856_v13 = vadd.f32 1e-05, %v854_v12 }
 0x92b   :  { %v853_v14 = vpop.xlane.xlu0 %852 }
 0x92c   :  { %1333 = vrsqrt.f32 %v856_v13  ;;  %v855_v15 = vmul.f32 0.03125, %v853_v14 }
 0x92e   :  { %v857_v16 = vadd.f32 1e-05, %v855_v15 }
 0x930   :  { %1335 = vrsqrt.f32 %v857_v16 }
 0x936   :  { %v1334_v17 = vpop.eup %1333 }
 0x937   :  { %v860_v19 = vmul.f32 %v1334_v17, %v844_v52 }
 0x939   :  { %v866_v21 = vmul.f32 %v1105_v18, %v860_v19 }
 0x93a   :  { %v1336_v22 = vpop.eup %1335 }
 0x93b   :  { %v861_v23 = vmul.f32 %v1336_v22, %v845_v55  ;;  %v872_v24 = vadd.f32 %v1106_v20, %v866_v21 }
 0x93d   :  { %v867_v25 = vmul.f32 %v1105_v18, %v861_v23  ;;  %1216 = vmatprep.mubr.msk.f32.mxu0 %vm30_vm0, %v872_v24 }
 0x93f   :  { %v873_v26 = vadd.f32 %v1106_v20, %v867_v25 }
 0x941   :  { %1217 = vmatmul.mubr.msk.f32.vlgmr.msra.gmra.mrb[14].mxu0 %vm30_vm0, %v873_v26 }
 0xa14   :  { %v1218_v43 = vpop.f32.mrb[14].mxu0 }
 0xa15   :  { %v960_v44 = vadd.f32 %v1218_v43, %v1107_v42  ;;  %v954_v46 = vpop.f32.mrb[15].mxu0 }
 0xa16   :  { %v955_v47 = vadd.f32 %v1107_v42, %v954_v46 }
 0xa17   :  { %v966_v49 = vmul.f32 0.70710677, %v960_v44  ;;  %v964_v55 = vmul.f32 0.5, %v960_v44 }
 0xa18   :  { %v965_v50 = vmul.f32 0.70710677, %v955_v47  ;;  %v963_v54 = vmul.f32 0.5, %v955_v47 }
 0xa19   :  { %1337 = verf.f32 %v966_v49 }
 0xa1a   :  { %1339 = verf.f32 %v965_v50 }
 0xa23   :  { %v1338_v51 = vpop.eup %1337 }
 0xa24   :  { %v1340_v52 = vpop.eup %1339  ;;  %v970_v53 = vadd.f32 1.0, %v1338_v51 }
 0xa25   :  { %v969_v0 = vadd.f32 1.0, %v1340_v52 }
 0xa26   :  { %v972_v57 = vmul.f32 %v970_v53, %v964_v55 }
 0xa27   :  { %v971_v56 = vmul.f32 %v969_v0, %v963_v54 }
 0xa29   :  { %1251 = vmatprep.mubr.f32.mxu1 %v971_v56 }
 0xa2a   :  { %1252 = vmatmul.mubr.f32.vlgmr.msra.gmra.mrb[4].mxu1 %v972_v57 }
 0xafd   :  { %v1253_v58 = vpop.f32.mrb[4].mxu1 }
 0xafe   :  { %v1065_v59 = vadd.f32 %v1253_v58, %v1110_v1  ;;  %v1059_v60 = vpop.f32.mrb[5].mxu1 }
 0xaff   :  { %v1060_v61 = vadd.f32 %v1110_v1, %v1059_v60 }
 0xb00   :  { %v1069_v62 = vadd.f32 %v1065_v59, %v1515_v48 }
 0xb01   :  { %v1068_v63 = vadd.f32 %v1060_v61, %v1510_v45 }
 0xb02   :  { %1071 = vst.msk [vmem:[#allocation3 + $0x8] sm:$0xff] %vm30_vm0, %v1069_v62 }
 0xb03   :  { %1070 = vst.msk [vmem:[#allocation3] sm:$0xff] %vm30_vm0, %v1068_v63 }
 0xb04   :  { %1352 = shalt.err (!%p1349_p4)
}
 0xb05   :  { %s1353_s10 = scalar_lea.hbm %s1618_s5, 256 }
 0xb06   :  { %p1354_p5 = scmp.ne.s32.totalorder %s1618_s5, %s1353_s10  ;;  %p1357_p6 = scmp.lt.u32.totalorder %s1353_s10, %s1618_s5 }
 0xb08   :  { %p1359_p7 = pnand %p1357_p6, %p1354_p5 }
 0xb0a   :  { %1362 = shalt.err (!%p1359_p7)
}
 0xb0b   :  { %s1374_s15 = smov 128   ;;  %s1375_s16 = smov 8  }
 0xb0c   :  { %1083 = dma.vmem_to_hbm [thread:$0]  %s1078_s7, 256, %s1618_s5, [#allocation4], %s1374_s15, %s1374_s15, %s1375_s16  }
 0xb0d   :  { %1363 = dma.done.wait [#allocation4], 256  }
 0xb0e   :  { %1364 = vsyncadd [#allocation4], 4294967040 }
 0xb0f   :  { %1087 = vsyncpa [#allocation4], 1 }

</bundles_post_ra>
